<compile_context>
chip_gen: v7x
topology: tpu7x:2x2x1
jax: 0.10.0
libtpu: 0.0.40
codegen_flags: <defaults>
</compile_context>

<pallas_src>
import functools

import jax
import jax.numpy as jnp
from jax.experimental import pallas as pl
from jax.experimental.pallas import tpu as pltpu


_LN_EPS = 1e-6
_MIB = 1024 * 1024
# v7x has 64 MiB VMEM per TensorCore; cap requests well below that so the
# compiler keeps headroom for internal scratch / semaphores / pipeline slack.
_VMEM_CAP = 56 * _MIB
_VMEM_TARGET = 48 * _MIB


def _round_up(x, m):
    return ((x + m - 1) // m) * m


def _layer_norm(x, gamma, beta, d_in_true):
    """LayerNorm over the last dim (f32); tolerates zero-padded trailing columns."""
    d_in_p = x.shape[-1]
    inv_n = jnp.float32(1.0 / d_in_true)
    mu = jnp.sum(x, axis=-1, keepdims=True) * inv_n       # pads are 0 -> sum exact
    diff = x - mu
    if d_in_p != d_in_true:
        # Masked two-pass variance: robust and immune to zero-padded columns.
        mask = jax.lax.broadcasted_iota(jnp.int32, x.shape, x.ndim - 1) < d_in_true
        diff = jnp.where(mask, diff, 0.0)
    var = jnp.sum(diff * diff, axis=-1, keepdims=True) * inv_n
    # Padded gamma/beta are zero, so padded output lanes stay zero.
    return diff * jax.lax.rsqrt(var + jnp.float32(_LN_EPS)) * gamma + beta


def _ffn_resident_kernel(x_ref, g_ref, be_ref, w1_ref, b1_ref, w2_ref, b2_ref,
                         o_ref, *, d_in_true, compute_dtype, approximate_gelu):
    """Weights-resident fast path: 1-D grid over row tiles, full W1/W2 in VMEM."""
    x = x_ref[...].astype(jnp.float32)
    xn = _layer_norm(x, g_ref[...], be_ref[...], d_in_true)
    h = jnp.dot(xn.astype(compute_dtype), w1_ref[...],
                preferred_element_type=jnp.float32)
    h = jax.nn.gelu(h + b1_ref[...], approximate=approximate_gelu)
    y = jnp.dot(h.astype(compute_dtype), w2_ref[...],
                preferred_element_type=jnp.float32)
    o_ref[...] = (y + b2_ref[...] + x).astype(o_ref.dtype)


def _ffn_streaming_kernel(x_ref, g_ref, be_ref, w1_ref, b1_ref, w2_ref, b2_ref,
                          o_ref, xn_ref, acc_ref, *, d_in_true, compute_dtype,
                          approximate_gelu):
    """Weight-streaming path: grid = (row_tiles, hid_tiles); hid is 'arbitrary'."""
    hid = pl.program_id(1)

    # LayerNorm once per row tile; cache the bf16 result for all hid steps.
    @pl.when(hid == 0)
    def _norm():
        x = x_ref[...].astype(jnp.float32)
        xn_ref[...] = _layer_norm(x, g_ref[...], be_ref[...],
                                  d_in_true).astype(compute_dtype)

    h = jnp.dot(xn_ref[...], w1_ref[...], preferred_element_type=jnp.float32)
    h = jax.nn.gelu(h + b1_ref[...], approximate=approximate_gelu)
    part = jnp.dot(h.astype(compute_dtype), w2_ref[...],
                   preferred_element_type=jnp.float32)

    @pl.when(hid == 0)
    def _seed():
        # Seed with bias + residual: saves the zero-init store and the +=
        # read-modify-write on the first hid step; finalize is a plain cast.
        acc_ref[...] = part + b2_ref[...] + x_ref[...].astype(jnp.float32)

    @pl.when(hid > 0)
    def _accum():
        acc_ref[...] += part

    @pl.when(hid == pl.num_programs(1) - 1)
    def _finalize():
        o_ref[...] = acc_ref[...].astype(o_ref.dtype)


def positionwise_ffn(x, gamma, beta, w1, b1, w2, b2, *,
                     tile_rows=512, tile_hid=1024,
                     compute_dtype=jnp.bfloat16,
                     approximate_gelu=True,
                     force_streaming=False):
    """PositionwiseFeedForward forward (normalize_before=True, eval mode).

    x: (B, S, d_in). w1: (d_in, d_hid), w2: (d_hid, d_in) (transposed vs
    nn.Linear.weight so the kernel computes x @ W).
    """
    B, S, d_in = x.shape
    d_hid = w1.shape[1]
    R = B * S

    xi = jnp.dtype(x.dtype).itemsize
    ci = jnp.dtype(compute_dtype).itemsize

    d_in_p = _round_up(d_in, 128)
    d_hid_128 = _round_up(d_hid, 128)

    # Row tiling: lane/MXU-friendly 128-multiples; prefer >= 2 row tiles so the
    # "parallel" axis can be sharded across the 2 TensorCores of a v7x chip.
    tile_rows = min(_round_up(tile_rows, 128), _round_up(R, 128))
    R_p = _round_up(R, tile_rows)
    while R_p // tile_rows < 2 and tile_rows > 128:
        tile_rows = max(128, _round_up(tile_rows // 2, 128))
        R_p = _round_up(R, tile_rows)

    row_block_bytes = 2 * tile_rows * d_in_p * xi * 2       # x + out, double-buffered
    vec_bytes = 2 * (d_hid_128 + 3 * d_in_p) * 4            # biases / gamma / beta

    # ---- weights-resident fast path ------------------------------------------
    resident_est = (row_block_bytes + vec_bytes
                    + 2 * 2 * d_in_p * d_hid_128 * ci)      # W1 + W2, double-buffered
    use_resident = (not force_streaming) and resident_est <= _VMEM_TARGET

    if use_resident:
        d_hid_p = d_hid_128
        grid = (R_p // tile_rows,)
        kernel = functools.partial(_ffn_resident_kernel, d_in_true=d_in,
                                   compute_dtype=compute_dtype,
                                   approximate_gelu=approximate_gelu)
        in_specs = [
            pl.BlockSpec((tile_rows, d_in_p), lambda i: (i, 0)),    # x rows
            pl.BlockSpec((1, d_in_p), lambda i: (0, 0)),            # gamma
            pl.BlockSpec((1, d_in_p), lambda i: (0, 0)),            # beta
            pl.BlockSpec((d_in_p, d_hid_p), lambda i: (0, 0)),      # W1 (resident)
            pl.BlockSpec((1, d_hid_p), lambda i: (0, 0)),           # b1
            pl.BlockSpec((d_hid_p, d_in_p), lambda i: (0, 0)),      # W2 (resident)
            pl.BlockSpec((1, d_in_p), lambda i: (0, 0)),            # b2
        ]
        out_specs = pl.BlockSpec((tile_rows, d_in_p), lambda i: (i, 0))
        scratch_shapes = []
        dim_sem = ("parallel",)
        est = resident_est
    else:
        # ---- weight-streaming path (hid is the reduction / 'arbitrary' axis) ----
        tile_hid = max(128, min(_round_up(tile_hid, 128), d_hid_128))

        def _stream_est(tr, th):
            return (2 * tr * d_in_p * xi * 2                    # x + out blocks
                    + 2 * 2 * d_in_p * th * ci                  # W1 / W2 tiles
                    + 2 * (th + 3 * d_in_p) * 4                 # biases / gamma / beta
                    + tr * d_in_p * (ci + 4))                   # xn + f32 acc scratch

        while _stream_est(tile_rows, tile_hid) > _VMEM_TARGET and tile_hid > 128:
            tile_hid = max(128, _round_up(tile_hid // 2, 128))
        while _stream_est(tile_rows, tile_hid) > _VMEM_TARGET and tile_rows > 128:
            tile_rows = max(128, _round_up(tile_rows // 2, 128))
            R_p = _round_up(R, tile_rows)

        d_hid_p = _round_up(d_hid, tile_hid)
        nk = d_hid_p // tile_hid
        grid = (R_p // tile_rows, nk)

        # Serpentine hid index: k on even row tiles, nk-1-k on odd ones, so the
        # weight tile in use at the end of row tile i is reused (no re-DMA) at
        # the start of row tile i+1. Only the summation order changes.
        def _serp(i, k):
            return k + (i % 2) * (nk - 1 - 2 * k)

        kernel = functools.partial(_ffn_streaming_kernel, d_in_true=d_in,
                                   compute_dtype=compute_dtype,
                                   approximate_gelu=approximate_gelu)
        in_specs = [
            pl.BlockSpec((tile_rows, d_in_p), lambda i, k: (i, 0)),          # x rows
            pl.BlockSpec((1, d_in_p), lambda i, k: (0, 0)),                  # gamma
            pl.BlockSpec((1, d_in_p), lambda i, k: (0, 0)),                  # beta
            pl.BlockSpec((d_in_p, tile_hid), lambda i, k: (0, _serp(i, k))),  # W1 cols
            pl.BlockSpec((1, tile_hid), lambda i, k: (0, _serp(i, k))),       # b1 tile
            pl.BlockSpec((tile_hid, d_in_p), lambda i, k: (_serp(i, k), 0)),  # W2 rows
            pl.BlockSpec((1, d_in_p), lambda i, k: (0, 0)),                  # b2
        ]
        out_specs = pl.BlockSpec((tile_rows, d_in_p), lambda i, k: (i, 0))
        scratch_shapes = [
            pltpu.VMEM((tile_rows, d_in_p), compute_dtype),   # cached LayerNorm(x)
            pltpu.VMEM((tile_rows, d_in_p), jnp.float32),     # f32 accumulator
        ]
        dim_sem = ("parallel", "arbitrary")
        est = _stream_est(tile_rows, tile_hid)

    # Host-side zero-padding to lane-dense 128 multiples (no masked vst.msk).
    x2 = jnp.pad(x.reshape(R, d_in), ((0, R_p - R), (0, d_in_p - d_in)))
    g2 = jnp.pad(gamma.astype(jnp.float32), (0, d_in_p - d_in)).reshape(1, d_in_p)
    be2 = jnp.pad(beta.astype(jnp.float32), (0, d_in_p - d_in)).reshape(1, d_in_p)
    w1p = jnp.pad(w1, ((0, d_in_p - d_in), (0, d_hid_p - d_hid))).astype(compute_dtype)
    b1p = jnp.pad(b1.astype(jnp.float32), (0, d_hid_p - d_hid)).reshape(1, d_hid_p)
    w2p = jnp.pad(w2, ((0, d_hid_p - d_hid), (0, d_in_p - d_in))).astype(compute_dtype)
    b2p = jnp.pad(b2.astype(jnp.float32), (0, d_in_p - d_in)).reshape(1, d_in_p)

    vmem_limit = int(min(_VMEM_CAP, max(32 * _MIB, int(est * 1.25))))

    out = pl.pallas_call(
        kernel,
        out_shape=jax.ShapeDtypeStruct((R_p, d_in_p), x.dtype),
        grid_spec=pltpu.PrefetchScalarGridSpec(
            num_scalar_prefetch=0,
            grid=grid,
            in_specs=in_specs,
            out_specs=out_specs,
            scratch_shapes=scratch_shapes,
        ),
        compiler_params=pltpu.CompilerParams(
            dimension_semantics=dim_sem,
            vmem_limit_bytes=vmem_limit,
        ),
    )(x2, g2, be2, w1p, b1p, w2p, b2p)

    return out[:R, :d_in].reshape(B, S, d_in)


def _reference(x, gamma, beta, w1, b1, w2, b2, compute_dtype=jnp.bfloat16,
               approximate_gelu=True):
    """Pure-JAX reference replicating the kernel's bf16-operand / f32-accum numerics."""
    xf = x.astype(jnp.float32)
    mu = jnp.mean(xf, axis=-1, keepdims=True)
    var = jnp.mean((xf - mu) ** 2, axis=-1, keepdims=True)
    xn = (xf - mu) * jax.lax.rsqrt(var + 1e-6) * gamma + beta
    h = jnp.dot(xn.astype(compute_dtype), w1.astype(compute_dtype),
                preferred_element_type=jnp.float32) + b1
    h = jax.nn.gelu(h, approximate=approximate_gelu)
    y = jnp.dot(h.astype(compute_dtype), w2.astype(compute_dtype),
                preferred_element_type=jnp.float32) + b2
    return (y + xf).astype(x.dtype)


if __name__ == "__main__":
    key = jax.random.PRNGKey(0)

    def run_case(k, B, S, d_in, d_hid, **kwargs):
        kx, kg, kb, k1, k2, k3, k4 = jax.random.split(k, 7)
        x = jax.random.normal(kx, (B, S, d_in), dtype=jnp.float32)
        # Parameters stored transposed vs nn.Linear.weight (kernel computes x @ W).
        w1 = jax.random.normal(k1, (d_in, d_hid), dtype=jnp.float32) / jnp.sqrt(d_in)
        b1 = jax.random.normal(k2, (d_hid,), dtype=jnp.float32) * 0.01
        w2 = jax.random.normal(k3, (d_hid, d_in), dtype=jnp.float32) / jnp.sqrt(d_hid)
        b2 = jax.random.normal(k4, (d_in,), dtype=jnp.float32) * 0.01
        gamma = 1.0 + 0.1 * jax.random.normal(kg, (d_in,), dtype=jnp.float32)
        beta = 0.05 * jax.random.normal(kb, (d_in,), dtype=jnp.float32)

        out = positionwise_ffn(x, gamma, beta, w1, b1, w2, b2, **kwargs)
        out = jax.block_until_ready(out)
        ref = _reference(x, gamma, beta, w1, b1, w2, b2)
        assert out.shape == (B, S, d_in)
        err = float(jnp.max(jnp.abs(out - ref)))
        assert jnp.allclose(out, ref, atol=5e-3, rtol=5e-3), f"max abs err {err}"

    ka, kb = jax.random.split(key)
    # Case 1: tiny shape -> weights-resident fast path (single hid step, 1-D grid).
    run_case(ka, B=2, S=8, d_in=32, d_hid=64)
    # Case 2: force the weight-streaming path (multi-step hid axis, serpentine
    # weight-tile reuse, seeded f32 accumulator).
    run_case(kb, B=2, S=16, d_in=32, d_hid=256, tile_hid=128, force_streaming=True)

    print("KERNEL_OK")
</pallas_src>

<mosaic_0001>
module attributes {stable_mosaic.version = 11 : i64} {
  func.func @_ffn_resident_kernel(%arg0: i32, %arg1: memref<128x128xf32, #tpu.memory_space<vmem>>, %arg2: memref<1x128xf32, #tpu.memory_space<vmem>>, %arg3: memref<1x128xf32, #tpu.memory_space<vmem>>, %arg4: memref<128x128xbf16, #tpu.memory_space<vmem>>, %arg5: memref<1x128xf32, #tpu.memory_space<vmem>>, %arg6: memref<128x128xbf16, #tpu.memory_space<vmem>>, %arg7: memref<1x128xf32, #tpu.memory_space<vmem>>, %arg8: memref<128x128xf32, #tpu.memory_space<vmem>>) attributes {dimension_semantics = [#tpu.dimension_semantics<parallel>], iteration_bounds = array<i64: 1>, scalar_prefetch = 0 : i64, scratch_operands = 0 : i64, tpu.core_type = #tpu.core_type<tc>, window_params = [{transform_indices = @transform_0, window_bounds = array<i64: 128, 128>}, {pipeline_mode = #tpu.pipeline_mode<synchronous>, transform_indices = @transform_1, window_bounds = array<i64: 1, 128>}, {pipeline_mode = #tpu.pipeline_mode<synchronous>, transform_indices = @transform_2, window_bounds = array<i64: 1, 128>}, {pipeline_mode = #tpu.pipeline_mode<synchronous>, transform_indices = @transform_3, window_bounds = array<i64: 128, 128>}, {pipeline_mode = #tpu.pipeline_mode<synchronous>, transform_indices = @transform_4, window_bounds = array<i64: 1, 128>}, {pipeline_mode = #tpu.pipeline_mode<synchronous>, transform_indices = @transform_5, window_bounds = array<i64: 128, 128>}, {pipeline_mode = #tpu.pipeline_mode<synchronous>, transform_indices = @transform_6, window_bounds = array<i64: 1, 128>}, {transform_indices = @transform_7, window_bounds = array<i64: 128, 128>}]} {
    %c0 = arith.constant 0 : index
    %c0_0 = arith.constant 0 : index
    %0 = vector.load %arg1[%c0, %c0_0] : memref<128x128xf32, #tpu.memory_space<vmem>>, vector<128x128xf32>
    %c0_1 = arith.constant 0 : index
    %c0_2 = arith.constant 0 : index
    %1 = vector.load %arg2[%c0_1, %c0_2] : memref<1x128xf32, #tpu.memory_space<vmem>>, vector<1x128xf32>
    %c0_3 = arith.constant 0 : index
    %c0_4 = arith.constant 0 : index
    %2 = vector.load %arg3[%c0_3, %c0_4] : memref<1x128xf32, #tpu.memory_space<vmem>>, vector<1x128xf32>
    %cst = arith.constant dense<0.000000e+00> : vector<128xf32>
    %3 = vector.multi_reduction <add>, %0, %cst [1] : vector<128x128xf32> to vector<128xf32>
    %4 = vector.shape_cast %3 : vector<128xf32> to vector<128x1xf32>
    %cst_5 = arith.constant 3.125000e-02 : f32
    %5 = vector.broadcast %cst_5 : f32 to vector<128x1xf32>
    %6 = arith.mulf %4, %5 : vector<128x1xf32>
    %7 = vector.broadcast %6 : vector<128x1xf32> to vector<128x128xf32>
    %8 = arith.subf %0, %7 : vector<128x128xf32>
    %9 = tpu.iota {dimensions = array<i32: 1>} : vector<128x128xi32>
    %c32_i32 = arith.constant 32 : i32
    %10 = vector.broadcast %c32_i32 : i32 to vector<128x128xi32>
    %11 = arith.cmpi slt, %9, %10 : vector<128x128xi32>
    %cst_6 = arith.constant 0.000000e+00 : f32
    %12 = vector.broadcast %cst_6 : f32 to vector<128x128xf32>
    %13 = arith.select %11, %8, %12 : vector<128x128xi1>, vector<128x128xf32>
    %14 = arith.mulf %13, %13 : vector<128x128xf32>
    %cst_7 = arith.constant dense<0.000000e+00> : vector<128xf32>
    %15 = vector.multi_reduction <add>, %14, %cst_7 [1] : vector<128x128xf32> to vector<128xf32>
    %16 = vector.shape_cast %15 : vector<128xf32> to vector<128x1xf32>
    %cst_8 = arith.constant 3.125000e-02 : f32
    %17 = vector.broadcast %cst_8 : f32 to vector<128x1xf32>
    %18 = arith.mulf %16, %17 : vector<128x1xf32>
    %cst_9 = arith.constant 9.99999997E-7 : f32
    %19 = vector.broadcast %cst_9 : f32 to vector<128x1xf32>
    %20 = arith.addf %18, %19 : vector<128x1xf32>
    %21 = math.rsqrt %20 : vector<128x1xf32>
    %22 = vector.broadcast %21 : vector<128x1xf32> to vector<128x128xf32>
    %23 = arith.mulf %13, %22 : vector<128x128xf32>
    %24 = vector.broadcast %1 : vector<1x128xf32> to vector<128x128xf32>
    %25 = arith.mulf %23, %24 : vector<128x128xf32>
    %26 = vector.broadcast %2 : vector<1x128xf32> to vector<128x128xf32>
    %27 = arith.addf %25, %26 : vector<128x128xf32>
    %28 = arith.truncf %27 : vector<128x128xf32> to vector<128x128xbf16>
    %c0_10 = arith.constant 0 : index
    %c0_11 = arith.constant 0 : index
    %29 = vector.load %arg4[%c0_10, %c0_11] : memref<128x128xbf16, #tpu.memory_space<vmem>>, vector<128x128xbf16>
    %cst_12 = arith.constant dense<0.000000e+00> : vector<128x128xf32>
    %30 = tpu.matmul %28, %29, %cst_12 {dimension_numbers = #tpu.dot_dimension_numbers<[1], [0], [0], [1], [0, 0, 1, 1], [], []>} : vector<128x128xbf16>, vector<128x128xbf16>, vector<128x128xf32> -> vector<128x128xf32>
    %c0_13 = arith.constant 0 : index
    %c0_14 = arith.constant 0 : index
    %31 = vector.load %arg5[%c0_13, %c0_14] : memref<1x128xf32, #tpu.memory_space<vmem>>, vector<1x128xf32>
    %32 = vector.broadcast %31 : vector<1x128xf32> to vector<128x128xf32>
    %33 = arith.addf %30, %32 : vector<128x128xf32>
    %34 = arith.mulf %33, %33 : vector<128x128xf32>
    %35 = arith.mulf %33, %34 : vector<128x128xf32>
    %cst_15 = arith.constant 4.471500e-02 : f32
    %36 = vector.broadcast %cst_15 : f32 to vector<128x128xf32>
    %37 = arith.mulf %36, %35 : vector<128x128xf32>
    %38 = arith.addf %33, %37 : vector<128x128xf32>
    %cst_16 = arith.constant 0.797884583 : f32
    %39 = vector.broadcast %cst_16 : f32 to vector<128x128xf32>
    %40 = arith.mulf %39, %38 : vector<128x128xf32>
    %41 = math.tanh %40 : vector<128x128xf32>
    %cst_17 = arith.constant 1.000000e+00 : f32
    %42 = vector.broadcast %cst_17 : f32 to vector<128x128xf32>
    %43 = arith.addf %42, %41 : vector<128x128xf32>
    %cst_18 = arith.constant 5.000000e-01 : f32
    %44 = vector.broadcast %cst_18 : f32 to vector<128x128xf32>
    %45 = arith.mulf %44, %43 : vector<128x128xf32>
    %46 = arith.mulf %33, %45 : vector<128x128xf32>
    %47 = arith.truncf %46 : vector<128x128xf32> to vector<128x128xbf16>
    %c0_19 = arith.constant 0 : index
    %c0_20 = arith.constant 0 : index
    %48 = vector.load %arg6[%c0_19, %c0_20] : memref<128x128xbf16, #tpu.memory_space<vmem>>, vector<128x128xbf16>
    %cst_21 = arith.constant dense<0.000000e+00> : vector<128x128xf32>
    %49 = tpu.matmul %47, %48, %cst_21 {dimension_numbers = #tpu.dot_dimension_numbers<[1], [0], [0], [1], [0, 0, 1, 1], [], []>} : vector<128x128xbf16>, vector<128x128xbf16>, vector<128x128xf32> -> vector<128x128xf32>
    %c0_22 = arith.constant 0 : index
    %c0_23 = arith.constant 0 : index
    %50 = vector.load %arg7[%c0_22, %c0_23] : memref<1x128xf32, #tpu.memory_space<vmem>>, vector<1x128xf32>
    %51 = vector.broadcast %50 : vector<1x128xf32> to vector<128x128xf32>
    %52 = arith.addf %49, %51 : vector<128x128xf32>
    %53 = arith.addf %52, %0 : vector<128x128xf32>
    %c0_24 = arith.constant 0 : index
    %c0_25 = arith.constant 0 : index
    %54 = vector.load %arg8[%c0_24, %c0_25] : memref<128x128xf32, #tpu.memory_space<vmem>>, vector<128x128xf32>
    tpu.vector_store %arg8[%c0_24, %c0_25], %53 {strides = array<i32>} : memref<128x128xf32, #tpu.memory_space<vmem>>, vector<128x128xf32>,
    return
  }
  func.func @transform_0(%arg0: i32) -> (i32, i32) {
    %c0_i32 = arith.constant 0 : i32
    %c0_i32_0 = arith.constant 0 : i32
    return %arg0, %c0_i32 : i32, i32
  }
  func.func @transform_1(%arg0: i32) -> (i32, i32) {
    %c0_i32 = arith.constant 0 : i32
    %c0_i32_0 = arith.constant 0 : i32
    %c0_i32_1 = arith.constant 0 : i32
    return %c0_i32, %c0_i32_0 : i32, i32
  }
  func.func @transform_2(%arg0: i32) -> (i32, i32) {
    %c0_i32 = arith.constant 0 : i32
    %c0_i32_0 = arith.constant 0 : i32
    %c0_i32_1 = arith.constant 0 : i32
    return %c0_i32, %c0_i32_0 : i32, i32
  }
  func.func @transform_3(%arg0: i32) -> (i32, i32) {
    %c0_i32 = arith.constant 0 : i32
    %c0_i32_0 = arith.constant 0 : i32
    %c0_i32_1 = arith.constant 0 : i32
    return %c0_i32, %c0_i32_0 : i32, i32
  }
  func.func @transform_4(%arg0: i32) -> (i32, i32) {
    %c0_i32 = arith.constant 0 : i32
    %c0_i32_0 = arith.constant 0 : i32
    %c0_i32_1 = arith.constant 0 : i32
    return %c0_i32, %c0_i32_0 : i32, i32
  }
  func.func @transform_5(%arg0: i32) -> (i32, i32) {
    %c0_i32 = arith.constant 0 : i32
    %c0_i32_0 = arith.constant 0 : i32
    %c0_i32_1 = arith.constant 0 : i32
    return %c0_i32, %c0_i32_0 : i32, i32
  }
  func.func @transform_6(%arg0: i32) -> (i32, i32) {
    %c0_i32 = arith.constant 0 : i32
    %c0_i32_0 = arith.constant 0 : i32
    %c0_i32_1 = arith.constant 0 : i32
    return %c0_i32, %c0_i32_0 : i32, i32
  }
  func.func @transform_7(%arg0: i32) -> (i32, i32) {
    %c0_i32 = arith.constant 0 : i32
    %c0_i32_0 = arith.constant 0 : i32
    return %arg0, %c0_i32 : i32, i32
  }
}

</mosaic_0001>

<bundles_post_ra>
// kernel: tpu_custom_call.1
= control target key start
LH: loop header
LB: loop body
LE: loop exit
PB: predicated region body
PF: predicated region fallthrough
CT: control target
= control target key end

     0   :  { %12 = vsyncpa [#allocation3], 0  ;;  %s1653_s0 = inlined_call_operand.hbm [shape: f32[128,128], index: 0, kind: input, shape index: {}]   ;;  %s1654_s1 = inlined_call_operand.vmem [shape: f32[1,128], index: 1, kind: input, shape index: {}]   ;;  %s1655_s2 = inlined_call_operand.vmem [shape: f32[1,128], index: 2, kind: input, shape index: {}]   ;;  %s1656_s3 = inlined_call_operand.hbm [shape: bf16[128,128], index: 3, kind: input, shape index: {}]   ;;  %s1657_s4 = inlined_call_operand.vmem [shape: f32[1,128], index: 4, kind: input, shape index: {}]   ;;  %s1658_s5 = inlined_call_operand.hbm [shape: bf16[128,128], index: 5, kind: input, shape index: {}]   ;;  %s1659_s6 = inlined_call_operand.vmem [shape: f32[1,128], index: 6, kind: input, shape index: {}]   ;;  %s1660_s7 = inlined_call_operand.hbm [shape: f32[128,128], index: 7, kind: output, shape index: {}]  }
   0x1   :  { %13 = vsyncpa [#allocation6], 0 }
   0x2   :  { %14 = vsyncpa [#allocation4], 0  ;;  %s1186_s24 = smov [#allocation5]   ;;  %s1092_s28 = scalar_lea.hbm %s1656_s3, 1024 }
   0x3   :  { %s36_s25 = sshll.u32 %s1186_s24, 4  ;;  %p1093_p0 = scmp.ne.s32.totalorder %s1656_s3, %s1092_s28  ;;  %s37_s25 = int_to_ptr.vmem [resolvable:$true] %s36_s25 }
   0x4   :  { %p1096_p1 = scmp.lt.u32.totalorder %s1092_s28, %s1656_s3 }
   0x6   :  { %p1098_p2 = pnand %p1096_p1, %p1093_p0 }
   0x8   :  { %1101 = shalt.err (!%p1098_p2)
}
   0x9   :  { %s1102_s10 = scalar_lea.vmem %s37_s25, 1024  ;;  %p1107_p4 = scmp.lt.s32.totalorder %s37_s25, %s37_s25 }
   0xa   :  { %p1103_p3 = scmp.ne.s32.totalorder %s37_s25, %s1102_s10  ;;  %p1108_p5 = scmp.lt.s32.totalorder %s1102_s10, %s1102_s10 }
   0xc   :  { %p1109_p6 = por %p1108_p5, %p1107_p4 }
   0xe   :  { %p1110_p7 = pnand %p1109_p6, %p1103_p3 }
  0x10   :  { %1113 = shalt.err (!%p1110_p7)
}
  0x11   :  { %s1187_s11 = smov 64   ;;  %s1188_s12 = smov 4  }
  0x12   :  { %42 = dma.hbm_to_vmem [thread:$0]  %s1656_s3, 1024, %s37_s25, [#allocation6], %s1187_s11, %s1187_s11, %s1188_s12  }
  0x13   :  { %s1189_s15 = smov [#allocation2]   ;;  %s1114_s19 = scalar_lea.hbm %s1653_s0, 2048 }
  0x14   :  { %s20_s16 = sshll.u32 %s1189_s15, 4  ;;  %p1115_p8 = scmp.ne.s32.totalorder %s1653_s0, %s1114_s19  ;;  %s21_s16 = int_to_ptr.vmem [resolvable:$true] %s20_s16 }
  0x15   :  { %p1118_p9 = scmp.lt.u32.totalorder %s1114_s19, %s1653_s0 }
  0x17   :  { %p1120_p10 = pnand %p1118_p9, %p1115_p8 }
  0x19   :  { %1123 = shalt.err (!%p1120_p10)
}
  0x1a   :  { %s1124_s24 = scalar_lea.vmem %s21_s16, 2048  ;;  %p1129_p12 = scmp.lt.s32.totalorder %s21_s16, %s21_s16 }
  0x1b   :  { %p1125_p11 = scmp.ne.s32.totalorder %s21_s16, %s1124_s24  ;;  %p1130_p13 = scmp.lt.s32.totalorder %s1124_s24, %s1124_s24 }
  0x1d   :  { %p1131_p0 = por %p1130_p13, %p1129_p12 }
  0x1f   :  { %p1132_p1 = pnand %p1131_p0, %p1125_p11 }
  0x21   :  { %1135 = shalt.err (!%p1132_p1)
}
  0x22   :  { %s1190_s3 = smov 128   ;;  %s1191_s25 = smov 8  }
  0x23   :  { %26 = dma.hbm_to_vmem [thread:$0]  %s1653_s0, 2048, %s21_s16, [#allocation3], %s1190_s3, %s1190_s3, %s1191_s25  }
  0x24   :  { %s1192_s28 = smov [#allocation7]   ;;  %s1136_s9 = scalar_lea.hbm %s1658_s5, 1024 }
  0x25   :  { %s50_s29 = sshll.u32 %s1192_s28, 4  ;;  %p1137_p2 = scmp.ne.s32.totalorder %s1658_s5, %s1136_s9  ;;  %s51_s29 = int_to_ptr.vmem [resolvable:$true] %s50_s29 }
  0x26   :  { %p1140_p3 = scmp.lt.u32.totalorder %s1136_s9, %s1658_s5 }
  0x28   :  { %p1142_p4 = pnand %p1140_p3, %p1137_p2 }
  0x2a   :  { %1145 = shalt.err (!%p1142_p4)
}
  0x2b   :  { %s1146_s17 = scalar_lea.vmem %s51_s29, 1024  ;;  %p1151_p6 = scmp.lt.s32.totalorder %s51_s29, %s51_s29 }
  0x2c   :  { %p1147_p5 = scmp.ne.s32.totalorder %s51_s29, %s1146_s17  ;;  %p1152_p7 = scmp.lt.s32.totalorder %s1146_s17, %s1146_s17 }
  0x2e   :  { %p1153_p8 = por %p1152_p7, %p1151_p6 }
  0x30   :  { %p1154_p9 = pnand %p1153_p8, %p1147_p5 }
  0x32   :  { %1157 = shalt.err (!%p1154_p9)
}
  0x33   :  { %56 = dma.hbm_to_vmem [thread:$0]  %s1658_s5, 1024, %s51_s29, [#allocation6], %s1187_s11, %s1187_s11, %s1188_s12  }
  0x34   :  { %1180 = dma.done.wait [#allocation3], 2048  }
  0x35   :  { %1181 = vsyncadd [#allocation3], 4294965248 }
  0x36   :  { %1182 = dma.done.wait [#allocation6], 2048  }
  0x37   :  { %1183 = vsyncadd [#allocation6], 4294965248  ;;  %v69_v0 = vld [vmem:[#allocation2] sm:$0xff]  ;;  %v71_v1 = vld [vmem:[#allocation2 + $0x10] sm:$0xff]  ;;  %v151_v17 = vlaneseq }
  0x38   :  { %87 = vadd.xlane.f32.xlu0 %v69_v0  ;;  %91 = vadd.xlane.f32.xlu1 %v71_v1  ;;  %v70_v2 = vld [vmem:[#allocation2 + $0x8] sm:$0xff]  ;;  %v72_v3 = vld [vmem:[#allocation2 + $0x18] sm:$0xff]  ;;  %v1279_v4 = vld [vmem:[#allocation2 + $0x20] sm:$0xff] }
  0x39   :  { %v1281_v5 = vld [vmem:[#allocation2 + $0x28] sm:$0xff]  ;;  %v1283_v6 = vld [vmem:[#allocation2 + $0x30] sm:$0xff]  ;;  %v1285_v7 = vld [vmem:[#allocation2 + $0x38] sm:$0xff]  ;;  %v1315_v18 = vand.u32 127, %v151_v17 }
  0x3a   :  { %v1289_v8 = vld [vmem:[#allocation2 + $0x40] sm:$0xff]  ;;  %v1291_v9 = vld [vmem:[#allocation2 + $0x48] sm:$0xff]  ;;  %v1297_v10 = vld [vmem:[#allocation2 + $0x50] sm:$0xff] }
  0x3b   :  { %v1299_v11 = vld [vmem:[#allocation2 + $0x58] sm:$0xff]  ;;  %v1303_v12 = vld [vmem:[#allocation2 + $0x60] sm:$0xff]  ;;  %v1305_v13 = vld [vmem:[#allocation2 + $0x68] sm:$0xff]  ;;  %vm153_vm0 = vcmp.lt.s32.totalorder %v1315_v18, 32 }
  0x3c   :  { %89 = vadd.xlane.f32.xlu0 %v70_v2  ;;  %93 = vadd.xlane.f32.xlu1 %v72_v3  ;;  %v1309_v14 = vld [vmem:[#allocation2 + $0x70] sm:$0xff]  ;;  %v1311_v15 = vld [vmem:[#allocation2 + $0x78] sm:$0xff]  ;;  %v996_v16 = vld [vmem:[#allocation5] sm:$0xff]  }
  0x3d   :  { %924 = vmatprep.subr.bf16.mxu0 %v996_v16  ;;  %v1002_v18 = vld [vmem:[#allocation5 + $0x30] sm:$0xff]  }
  0x3e   :  { %925 = vmatpush3.bf16.msra.mxu0 %v996_v16  ;;  %v997_v16 = vld [vmem:[#allocation5 + $0x8] sm:$0xff]  }
  0x3f   :  { %926 = vmatprep.subr.bf16.mxu0 %v997_v16 }
  0x40   :  { %95 = vadd.xlane.f32.xlu0 %v1279_v4  ;;  %97 = vadd.xlane.f32.xlu1 %v1281_v5 }
  0x42   :  { %927 = vmatpush3.bf16.msra.mxu0 %v997_v16 }
  0x44   :  { %99 = vadd.xlane.f32.xlu0 %v1283_v6  ;;  %101 = vadd.xlane.f32.xlu1 %v1285_v7 }
  0x48   :  { %103 = vadd.xlane.f32.xlu0 %v1289_v8  ;;  %105 = vadd.xlane.f32.xlu1 %v1291_v9 }
  0x4c   :  { %107 = vadd.xlane.f32.xlu0 %v1297_v10  ;;  %109 = vadd.xlane.f32.xlu1 %v1299_v11 }
  0x50   :  { %111 = vadd.xlane.f32.xlu0 %v1303_v12  ;;  %113 = vadd.xlane.f32.xlu1 %v1305_v13 }
  0x54   :  { %115 = vadd.xlane.f32.xlu0 %v1309_v14  ;;  %117 = vadd.xlane.f32.xlu1 %v1311_v15 }
  0xc5   :  { %v88_v19 = vpop.xlane.xlu0 %87  ;;  %v92_v20 = vpop.xlane.xlu1 %91 }
  0xc6   :  { %v119_v21 = vmul.f32 0.03125, %v88_v19  ;;  %v121_v22 = vmul.f32 0.03125, %v92_v20 }
  0xc8   :  { %v135_v23 = vsub.f32 %v69_v0, %v119_v21  ;;  %v137_v24 = vsub.f32 %v71_v1, %v121_v22 }
  0xc9   :  { %v90_v25 = vpop.xlane.xlu0 %89  ;;  %v94_v26 = vpop.xlane.xlu1 %93 }
  0xca   :  { %v120_v27 = vmul.f32 0.03125, %v90_v25  ;;  %v122_v28 = vmul.f32 0.03125, %v94_v26  ;;  %v1320_v29 = vsel %vm153_vm0, %v135_v23, 0.0  ;;  %v1324_v30 = vsel %vm153_vm0, %v137_v24, 0.0 }
  0xcb   :  { %v170_v31 = vmul.f32 %v1320_v29, %v1320_v29  ;;  %v172_v36 = vmul.f32 %v1324_v30, %v1324_v30 }
  0xcc   :  { %v136_v32 = vsub.f32 %v70_v2, %v120_v27  ;;  %v138_v33 = vsub.f32 %v72_v3, %v122_v28 }
  0xcd   :  { %186 = vadd.xlane.f32.xlu0 %v170_v31  ;;  %v96_v34 = vpop.xlane.xlu0 %95  ;;  %v98_v35 = vpop.xlane.xlu1 %97  ;;  %v998_v31 = vld [vmem:[#allocation5 + $0x10] sm:$0xff]  }
  0xce   :  { %v123_v37 = vmul.f32 0.03125, %v96_v34  ;;  %v124_v38 = vmul.f32 0.03125, %v98_v35  ;;  %v1332_v39 = vsel %vm153_vm0, %v136_v32, 0.0  ;;  %v1336_v40 = vsel %vm153_vm0, %v138_v33, 0.0  ;;  %928 = vmatprep.subr.bf16.mxu0 %v998_v31 }
  0xcf   :  { %v171_v41 = vmul.f32 %v1332_v39, %v1332_v39  ;;  %v173_v46 = vmul.f32 %v1336_v40, %v1336_v40  ;;  %929 = vmatpush3.bf16.msra.mxu0 %v998_v31 }
  0xd0   :  { %v139_v42 = vsub.f32 %v1279_v4, %v123_v37  ;;  %v140_v43 = vsub.f32 %v1281_v5, %v124_v38  ;;  %v999_v38 = vld [vmem:[#allocation5 + $0x18] sm:$0xff]  }
  0xd1   :  { %190 = vadd.xlane.f32.xlu0 %v172_v36  ;;  %188 = vadd.xlane.f32.xlu1 %v171_v41  ;;  %v100_v44 = vpop.xlane.xlu0 %99  ;;  %v102_v45 = vpop.xlane.xlu1 %101 }
  0xd2   :  { %v125_v47 = vmul.f32 0.03125, %v100_v44  ;;  %v126_v48 = vmul.f32 0.03125, %v102_v45  ;;  %v1346_v49 = vsel %vm153_vm0, %v139_v42, 0.0  ;;  %v1350_v50 = vsel %vm153_vm0, %v140_v43, 0.0  ;;  %930 = vmatprep.subr.bf16.mxu0 %v999_v38  ;;  %v1000_v43 = vld [vmem:[#allocation5 + $0x20] sm:$0xff]   ;;  %v1001_v44 = vld [vmem:[#allocation5 + $0x28] sm:$0xff]  }
  0xd3   :  { %v174_v51 = vmul.f32 %v1346_v49, %v1346_v49  ;;  %v175_v56 = vmul.f32 %v1350_v50, %v1350_v50  ;;  %931 = vmatpush3.bf16.msra.mxu0 %v999_v38  ;;  %v1003_v45 = vld [vmem:[#allocation5 + $0x38] sm:$0xff]  }
  0xd4   :  { %v141_v52 = vsub.f32 %v1283_v6, %v125_v47  ;;  %v142_v53 = vsub.f32 %v1285_v7, %v126_v48  ;;  %932 = vmatprep.subr.bf16.mxu0 %v1000_v43 }
  0xd5   :  { %192 = vadd.xlane.f32.xlu1 %v173_v46  ;;  %194 = vadd.xlane.f32.xlu0 %v174_v51  ;;  %v104_v54 = vpop.xlane.xlu0 %103  ;;  %v106_v55 = vpop.xlane.xlu1 %105 }
  0xd6   :  { %v127_v57 = vmul.f32 0.03125, %v104_v54  ;;  %v128_v58 = vmul.f32 0.03125, %v106_v55  ;;  %v1360_v59 = vsel %vm153_vm0, %v141_v52, 0.0  ;;  %v1364_v60 = vsel %vm153_vm0, %v142_v53, 0.0 }
  0xd7   :  { %v176_v61 = vmul.f32 %v1360_v59, %v1360_v59  ;;  %v177_v2 = vmul.f32 %v1364_v60, %v1364_v60  ;;  %933 = vmatpush3.bf16.msra.mxu0 %v1000_v43 }
  0xd8   :  { %v143_v62 = vsub.f32 %v1289_v8, %v127_v57  ;;  %v144_v63 = vsub.f32 %v1291_v9, %v128_v58  ;;  %934 = vmatprep.subr.bf16.mxu0 %v1001_v44 }
  0xd9   :  { %196 = vadd.xlane.f32.xlu1 %v175_v56  ;;  %198 = vadd.xlane.f32.xlu0 %v176_v61  ;;  %v108_v0 = vpop.xlane.xlu0 %107  ;;  %v110_v1 = vpop.xlane.xlu1 %109 }
  0xda   :  { %v129_v3 = vmul.f32 0.03125, %v108_v0  ;;  %v130_v4 = vmul.f32 0.03125, %v110_v1  ;;  %v1374_v5 = vsel %vm153_vm0, %v143_v62, 0.0  ;;  %v1378_v6 = vsel %vm153_vm0, %v144_v63, 0.0 }
  0xdb   :  { %v178_v7 = vmul.f32 %v1374_v5, %v1374_v5  ;;  %v179_v20 = vmul.f32 %v1378_v6, %v1378_v6  ;;  %935 = vmatpush3.bf16.msra.mxu0 %v1001_v44 }
  0xdc   :  { %v145_v8 = vsub.f32 %v1297_v10, %v129_v3  ;;  %v146_v9 = vsub.f32 %v1299_v11, %v130_v4  ;;  %936 = vmatprep.subr.bf16.mxu0 %v1002_v18 }
  0xdd   :  { %200 = vadd.xlane.f32.xlu1 %v177_v2  ;;  %202 = vadd.xlane.f32.xlu0 %v178_v7  ;;  %v112_v17 = vpop.xlane.xlu0 %111  ;;  %v114_v19 = vpop.xlane.xlu1 %113 }
  0xde   :  { %v131_v21 = vmul.f32 0.03125, %v112_v17  ;;  %v132_v22 = vmul.f32 0.03125, %v114_v19  ;;  %v1388_v23 = vsel %vm153_vm0, %v145_v8, 0.0  ;;  %v1392_v24 = vsel %vm153_vm0, %v146_v9, 0.0 }
  0xdf   :  { %v180_v10 = vmul.f32 %v1388_v23, %v1388_v23  ;;  %v181_v28 = vmul.f32 %v1392_v24, %v1392_v24  ;;  %937 = vmatpush3.bf16.msra.mxu0 %v1002_v18 }
  0xe0   :  { %v147_v11 = vsub.f32 %v1303_v12, %v131_v21  ;;  %v148_v25 = vsub.f32 %v1305_v13, %v132_v22  ;;  %938 = vmatprep.subr.bf16.mxu0 %v1003_v45  ;;  %v1430_v22 = vld [vmem:[%s1654_s1] ss:$0 sm:$0xff] }
  0xe1   :  { %204 = vadd.xlane.f32.xlu1 %v179_v20  ;;  %206 = vadd.xlane.f32.xlu0 %v180_v10  ;;  %v116_v26 = vpop.xlane.xlu0 %115  ;;  %v118_v27 = vpop.xlane.xlu1 %117 }
  0xe2   :  { %v133_v32 = vmul.f32 0.03125, %v116_v26  ;;  %v134_v33 = vmul.f32 0.03125, %v118_v27  ;;  %v1402_v34 = vsel %vm153_vm0, %v147_v11, 0.0  ;;  %v1406_v35 = vsel %vm153_vm0, %v148_v25, 0.0 }
  0xe3   :  { %v182_v12 = vmul.f32 %v1402_v34, %v1402_v34  ;;  %v183_v37 = vmul.f32 %v1406_v35, %v1406_v35  ;;  %939 = vmatpush3.bf16.msra.mxu0 %v1003_v45 }
  0xe4   :  { %v149_v13 = vsub.f32 %v1309_v14, %v133_v32  ;;  %v150_v36 = vsub.f32 %v1311_v15, %v134_v33 }
  0xe5   :  { %208 = vadd.xlane.f32.xlu1 %v181_v28  ;;  %210 = vadd.xlane.f32.xlu0 %v182_v12  ;;  %v1437_v12 = vld [vmem:[%s1655_s2] ss:$0 sm:$0xff] }
  0xe6   :  { %v1416_v41 = vsel %vm153_vm0, %v149_v13, 0.0  ;;  %v1420_v42 = vsel %vm153_vm0, %v150_v36, 0.0 }
  0xe7   :  { %v184_v14 = vmul.f32 %v1416_v41, %v1416_v41  ;;  %v185_v15 = vmul.f32 %v1420_v42, %v1420_v42 }
  0xe9   :  { %212 = vadd.xlane.f32.xlu1 %v183_v37  ;;  %214 = vadd.xlane.f32.xlu0 %v184_v14 }
  0xed   :  { %216 = vadd.xlane.f32.xlu1 %v185_v15 }
 0x15a   :  { %v187_v46 = vpop.xlane.xlu0 %186 }
 0x15b   :  { %v218_v47 = vmul.f32 0.03125, %v187_v46 }
 0x15d   :  { %v234_v48 = vadd.f32 1e-06, %v218_v47 }
 0x15e   :  { %v189_v51 = vpop.xlane.xlu1 %188  ;;  %v191_v52 = vpop.xlane.xlu0 %190 }
 0x15f   :  { %1012 = vrsqrt.f32 %v234_v48  ;;  %v219_v53 = vmul.f32 0.03125, %v189_v51  ;;  %v220_v54 = vmul.f32 0.03125, %v191_v52 }
 0x161   :  { %v235_v55 = vadd.f32 1e-06, %v219_v53  ;;  %v236_v56 = vadd.f32 1e-06, %v220_v54 }
 0x162   :  { %v193_v57 = vpop.xlane.xlu1 %192  ;;  %v195_v58 = vpop.xlane.xlu0 %194 }
 0x163   :  { %1014 = vrsqrt.f32 %v235_v55  ;;  %v221_v61 = vmul.f32 0.03125, %v193_v57  ;;  %v222_v62 = vmul.f32 0.03125, %v195_v58 }
 0x164   :  { %1016 = vrsqrt.f32 %v236_v56 }
 0x165   :  { %v237_v63 = vadd.f32 1e-06, %v221_v61  ;;  %v238_v0 = vadd.f32 1e-06, %v222_v62 }
 0x166   :  { %v197_v1 = vpop.xlane.xlu1 %196  ;;  %v199_v2 = vpop.xlane.xlu0 %198 }
 0x167   :  { %1018 = vrsqrt.f32 %v237_v63  ;;  %v223_v3 = vmul.f32 0.03125, %v197_v1  ;;  %v224_v4 = vmul.f32 0.03125, %v199_v2 }
 0x168   :  { %1020 = vrsqrt.f32 %v238_v0 }
 0x169   :  { %v1013_v7 = vpop.eup %1012  ;;  %v239_v8 = vadd.f32 1e-06, %v223_v3  ;;  %v240_v9 = vadd.f32 1e-06, %v224_v4 }
 0x16a   :  { %v201_v16 = vpop.xlane.xlu1 %200  ;;  %v203_v17 = vpop.xlane.xlu0 %202  ;;  %v266_v19 = vmul.f32 %v1013_v7, %v1320_v29 }
 0x16b   :  { %1022 = vrsqrt.f32 %v239_v8  ;;  %v225_v20 = vmul.f32 0.03125, %v201_v16  ;;  %v226_v21 = vmul.f32 0.03125, %v203_v17 }
 0x16c   :  { %1024 = vrsqrt.f32 %v240_v9  ;;  %v288_v32 = vmul.f32 %v1430_v22, %v266_v19 }
 0x16d   :  { %v1015_v10 = vpop.eup %1014  ;;  %v241_v11 = vadd.f32 1e-06, %v225_v20  ;;  %v242_v25 = vadd.f32 1e-06, %v226_v21 }
 0x16e   :  { %v1017_v26 = vpop.eup %1016  ;;  %v205_v27 = vpop.xlane.xlu1 %204  ;;  %v267_v31 = vmul.f32 %v1015_v10, %v1332_v39  ;;  %v310_v44 = vadd.f32 %v1437_v12, %v288_v32 }
 0x16f   :  { %v207_v28 = vpop.xlane.xlu0 %206  ;;  %1026 = vrsqrt.f32 %v241_v11  ;;  %v227_v29 = vmul.f32 0.03125, %v205_v27  ;;  %v268_v13 = vmul.f32 %v1017_v26, %v1324_v30 }
 0x170   :  { %v228_v33 = vmul.f32 0.03125, %v207_v28  ;;  %1028 = vrsqrt.f32 %v242_v25  ;;  %v289_v36 = vmul.f32 %v1430_v22, %v267_v31 }
 0x171   :  { %v1019_v37 = vpop.eup %1018  ;;  %v243_v38 = vadd.f32 1e-06, %v227_v29  ;;  %v290_v46 = vmul.f32 %v1430_v22, %v268_v13 }
 0x172   :  { %v244_v14 = vadd.f32 1e-06, %v228_v33  ;;  %v1021_v15 = vpop.eup %1020  ;;  %v209_v39 = vpop.xlane.xlu1 %208  ;;  %v311_v18 = vadd.f32 %v1437_v12, %v289_v36  ;;  %v269_v45 = vmul.f32 %v1019_v37, %v1336_v40 }
 0x173   :  { %v211_v43 = vpop.xlane.xlu0 %210  ;;  %1030 = vrsqrt.f32 %v243_v38  ;;  %v229_v47 = vmul.f32 0.03125, %v209_v39  ;;  %v270_v52 = vmul.f32 %v1021_v15, %v1346_v49  ;;  %v312_v40 = vadd.f32 %v1437_v12, %v290_v46 }
 0x174   :  { %v230_v30 = vmul.f32 0.03125, %v211_v43  ;;  %1032 = vrsqrt.f32 %v244_v14  ;;  %v326_v48 = vpack.c.bf16 %v311_v18, %v310_v44  ;;  %v291_v51 = vmul.f32 %v1430_v22, %v269_v45 }
 0x175   :  { %v1023_v53 = vpop.eup %1022  ;;  %v245_v54 = vadd.f32 1e-06, %v229_v47  ;;  %v292_v63 = vmul.f32 %v1430_v22, %v270_v52 }
 0x176   :  { %v246_v55 = vadd.f32 1e-06, %v230_v30  ;;  %v1025_v56 = vpop.eup %1024  ;;  %v213_v57 = vpop.xlane.xlu1 %212  ;;  %940 = vmatprep.mubr.bf16.mxu0 %v326_v48  ;;  %v313_v61 = vadd.f32 %v1437_v12, %v291_v51  ;;  %v271_v62 = vmul.f32 %v1023_v53, %v1350_v50 }
 0x177   :  { %v215_v58 = vpop.xlane.xlu0 %214  ;;  %1034 = vrsqrt.f32 %v245_v54  ;;  %v231_v0 = vmul.f32 0.03125, %v213_v57  ;;  %v272_v49 = vmul.f32 %v1025_v56, %v1360_v59  ;;  %v314_v17 = vadd.f32 %v1437_v12, %v292_v63  ;;  %v1011_v63 = vld [vmem:[#allocation7 + $0x38] sm:$0xff]  }
 0x178   :  { %v232_v1 = vmul.f32 0.03125, %v215_v58  ;;  %1036 = vrsqrt.f32 %v246_v55  ;;  %v327_v2 = vpack.c.bf16 %v313_v61, %v312_v40  ;;  %v293_v3 = vmul.f32 %v1430_v22, %v271_v62  ;;  %v1004_v58 = vld [vmem:[#allocation7] sm:$0xff]   ;;  %v1005_v40 = vld [vmem:[#allocation7 + $0x8] sm:$0xff]   ;;  %v1006_v61 = vld [vmem:[#allocation7 + $0x10] sm:$0xff]  }
 0x179   :  { %v1027_v4 = vpop.eup %1026  ;;  %v247_v7 = vadd.f32 1e-06, %v231_v0  ;;  %v294_v20 = vmul.f32 %v1430_v22, %v272_v49  ;;  %956 = vmatprep.subr.bf16.mxu1 %v1004_v58  ;;  %v1009_v62 = vld [vmem:[#allocation7 + $0x28] sm:$0xff]   ;;  %v1487_v0 = vld [vmem:[%s1657_s4] ss:$0 sm:$0xff] }
 0x17a   :  { %v248_v8 = vadd.f32 1e-06, %v232_v1  ;;  %v1029_v9 = vpop.eup %1028  ;;  %v217_v16 = vpop.xlane.xlu1 %216  ;;  %941 = vmatmul.mubr.bf16.vlgmr.msra.gmra.mrb[0].mxu0 %v327_v2  ;;  %v315_v50 = vadd.f32 %v1437_v12, %v293_v3  ;;  %v273_v19 = vmul.f32 %v1027_v4, %v1364_v60  ;;  %957 = vmatpush3.bf16.msra.mxu1 %v1004_v58 }
 0x17b   :  { %1038 = vrsqrt.f32 %v247_v7  ;;  %v233_v59 = vmul.f32 0.03125, %v217_v16  ;;  %v274_v21 = vmul.f32 %v1029_v9, %v1374_v5  ;;  %v316_v28 = vadd.f32 %v1437_v12, %v294_v20  ;;  %958 = vmatprep.subr.bf16.mxu1 %v1005_v40 }
 0x17c   :  { %1040 = vrsqrt.f32 %v248_v8  ;;  %v328_v10 = vpack.c.bf16 %v315_v50, %v314_v17  ;;  %v295_v11 = vmul.f32 %v1430_v22, %v273_v19 }
 0x17d   :  { %v1031_v25 = vpop.eup %1030  ;;  %v249_v26 = vadd.f32 1e-06, %v233_v59  ;;  %v296_v32 = vmul.f32 %v1430_v22, %v274_v21 }
 0x17e   :  { %v1033_v27 = vpop.eup %1032  ;;  %944 = vmatprep.mubr.bf16.mxu0 %v328_v10  ;;  %v317_v31 = vadd.f32 %v1437_v12, %v295_v11  ;;  %v275_v60 = vmul.f32 %v1031_v25, %v1378_v6  ;;  %959 = vmatpush3.bf16.msra.mxu1 %v1005_v40 }
 0x17f   :  { %1042 = vrsqrt.f32 %v249_v26  ;;  %v276_v29 = vmul.f32 %v1033_v27, %v1388_v23  ;;  %v318_v37 = vadd.f32 %v1437_v12, %v296_v32  ;;  %960 = vmatprep.subr.bf16.mxu1 %v1006_v61 }
 0x180   :  { %v329_v5 = vpack.c.bf16 %v317_v31, %v316_v28  ;;  %v297_v33 = vmul.f32 %v1430_v22, %v275_v60 }
 0x181   :  { %v1035_v13 = vpop.eup %1034  ;;  %v298_v15 = vmul.f32 %v1430_v22, %v276_v29 }
 0x182   :  { %v1037_v36 = vpop.eup %1036  ;;  %945 = vmatmul.mubr.bf16.gmra.mrb[4].mxu0 %v329_v5  ;;  %v319_v38 = vadd.f32 %v1437_v12, %v297_v33  ;;  %v277_v14 = vmul.f32 %v1035_v13, %v1392_v24  ;;  %961 = vmatpush3.bf16.msra.mxu1 %v1006_v61 }
 0x183   :  { %v278_v6 = vmul.f32 %v1037_v36, %v1402_v34  ;;  %v320_v18 = vadd.f32 %v1437_v12, %v298_v15 }
 0x184   :  { %v330_v39 = vpack.c.bf16 %v319_v38, %v318_v37  ;;  %v299_v43 = vmul.f32 %v1430_v22, %v277_v14 }
 0x185   :  { %v1039_v23 = vpop.eup %1038  ;;  %v300_v47 = vmul.f32 %v1430_v22, %v278_v6 }
 0x186   :  { %v1041_v44 = vpop.eup %1040  ;;  %948 = vmatprep.mubr.bf16.mxu0 %v330_v39  ;;  %v321_v45 = vadd.f32 %v1437_v12, %v299_v43  ;;  %v279_v46 = vmul.f32 %v1039_v23, %v1406_v35 }
 0x187   :  { %v280_v24 = vmul.f32 %v1041_v44, %v1416_v41  ;;  %v322_v51 = vadd.f32 %v1437_v12, %v300_v47 }
 0x188   :  { %v331_v30 = vpack.c.bf16 %v321_v45, %v320_v18  ;;  %v301_v48 = vmul.f32 %v1430_v22, %v279_v46 }
 0x189   :  { %v1043_v34 = vpop.eup %1042  ;;  %v302_v54 = vmul.f32 %v1430_v22, %v280_v24 }
 0x18a   :  { %949 = vmatmul.mubr.bf16.gmra.mrb[8].mxu0 %v331_v30  ;;  %v323_v52 = vadd.f32 %v1437_v12, %v301_v48  ;;  %v281_v53 = vmul.f32 %v1043_v34, %v1420_v42  ;;  %v1007_v42 = vld [vmem:[#allocation7 + $0x18] sm:$0xff]  }
 0x18b   :  { %v324_v56 = vadd.f32 %v1437_v12, %v302_v54  ;;  %962 = vmatprep.subr.bf16.mxu1 %v1007_v42 }
 0x18c   :  { %v332_v55 = vpack.c.bf16 %v323_v52, %v322_v51  ;;  %v303_v35 = vmul.f32 %v1430_v22, %v281_v53  ;;  %963 = vmatpush3.bf16.msra.mxu1 %v1007_v42  ;;  %v1008_v22 = vld [vmem:[#allocation7 + $0x20] sm:$0xff]  }
 0x18d   :  { %964 = vmatprep.subr.bf16.mxu1 %v1008_v22 }
 0x18e   :  { %952 = vmatprep.mubr.bf16.mxu0 %v332_v55  ;;  %v325_v41 = vadd.f32 %v1437_v12, %v303_v35  ;;  %v1010_v12 = vld [vmem:[#allocation7 + $0x30] sm:$0xff]  }
 0x190   :  { %v333_v57 = vpack.c.bf16 %v325_v41, %v324_v56  ;;  %965 = vmatpush3.bf16.msra.mxu1 %v1008_v22 }
 0x191   :  { %966 = vmatprep.subr.bf16.mxu1 %v1009_v62 }
 0x192   :  { %953 = vmatmul.mubr.bf16.gmra.mrb[12].mxu0 %v333_v57 }
 0x194   :  { %967 = vmatpush3.bf16.msra.mxu1 %v1009_v62 }
 0x195   :  { %968 = vmatprep.subr.bf16.mxu1 %v1010_v12 }
 0x198   :  { %969 = vmatpush3.bf16.msra.mxu1 %v1010_v12 }
 0x199   :  { %970 = vmatprep.subr.bf16.mxu1 %v1011_v63 }
 0x19c   :  { %971 = vmatpush3.bf16.msra.mxu1 %v1011_v63 }
 0x24d   :  { %v942_v1 = vpop.f32.mrb[0].mxu0 }
 0x24e   :  { %v1490_v49 = vadd.f32 %v942_v1, %v1487_v0  ;;  %v439_v2 = vpop.f32.mrb[1].mxu0 }
 0x24f   :  { %v1493_v3 = vadd.f32 %v1487_v0, %v439_v2  ;;  %v943_v4 = vpop.f32.mrb[2].mxu0 }
 0x250   :  { %v504_v7 = vmul.f32 %v1490_v49, %v1490_v49  ;;  %v1498_v8 = vadd.f32 %v943_v4, %v1487_v0  ;;  %v442_v9 = vpop.f32.mrb[3].mxu0 }
 0x251   :  { %v502_v16 = vmul.f32 %v1493_v3, %v1493_v3  ;;  %v1503_v17 = vadd.f32 %v1487_v0, %v442_v9 }
 0x252   :  { %v520_v50 = vmul.f32 %v504_v7, %v1490_v49  ;;  %v505_v19 = vmul.f32 %v1498_v8, %v1498_v8 }
 0x253   :  { %v518_v20 = vmul.f32 %v502_v16, %v1493_v3  ;;  %v503_v59 = vmul.f32 %v1503_v17, %v1503_v17 }
 0x254   :  { %v536_v21 = vmul.f32 0.044715, %v520_v50  ;;  %v521_v10 = vmul.f32 %v505_v19, %v1498_v8 }
 0x255   :  { %v534_v11 = vmul.f32 0.044715, %v518_v20  ;;  %v519_v25 = vmul.f32 %v503_v59, %v1503_v17  ;;  %v946_v26 = vpop.f32.mrb[4].mxu0 }
 0x256   :  { %v552_v27 = vadd.f32 %v536_v21, %v1490_v49  ;;  %v537_v28 = vmul.f32 0.044715, %v521_v10  ;;  %v1515_v31 = vadd.f32 %v946_v26, %v1487_v0  ;;  %v455_v60 = vpop.f32.mrb[5].mxu0 }
 0x257   :  { %v535_v32 = vmul.f32 0.044715, %v519_v25  ;;  %v1518_v29 = vadd.f32 %v1487_v0, %v455_v60  ;;  %v947_v5 = vpop.f32.mrb[6].mxu0  ;;  %v550_v33 = vadd.f32 %v534_v11, %v1493_v3 }
 0x258   :  { %v568_v13 = vmul.f32 0.7978846, %v552_v27  ;;  %v553_v36 = vadd.f32 %v537_v28, %v1498_v8  ;;  %v508_v37 = vmul.f32 %v1515_v31, %v1515_v31  ;;  %v1525_v38 = vadd.f32 %v947_v5, %v1487_v0  ;;  %v458_v14 = vpop.f32.mrb[7].mxu0 }
 0x259   :  { %v506_v15 = vmul.f32 %v1518_v29, %v1518_v29  ;;  %v1530_v6 = vadd.f32 %v1487_v0, %v458_v14  ;;  %v551_v39 = vadd.f32 %v535_v32, %v1503_v17  ;;  %v566_v43 = vmul.f32 0.7978846, %v550_v33 }
 0x25a   :  { %1044 = vtanh.f32 %v568_v13  ;;  %v569_v23 = vmul.f32 0.7978846, %v553_v36  ;;  %v524_v44 = vmul.f32 %v508_v37, %v1515_v31  ;;  %v509_v18 = vmul.f32 %v1525_v38, %v1525_v38 }
 0x25b   :  { %v522_v45 = vmul.f32 %v506_v15, %v1518_v29  ;;  %v507_v46 = vmul.f32 %v1530_v6, %v1530_v6  ;;  %v567_v47 = vmul.f32 0.7978846, %v551_v39  ;;  %1046 = vtanh.f32 %v566_v43 }
 0x25c   :  { %1048 = vtanh.f32 %v569_v23  ;;  %v540_v24 = vmul.f32 0.044715, %v524_v44  ;;  %v525_v30 = vmul.f32 %v509_v18, %v1525_v38 }
 0x25d   :  { %v538_v48 = vmul.f32 0.044715, %v522_v45  ;;  %v523_v34 = vmul.f32 %v507_v46, %v1530_v6  ;;  %v950_v51 = vpop.f32.mrb[8].mxu0  ;;  %1050 = vtanh.f32 %v567_v47 }
 0x25e   :  { %v556_v52 = vadd.f32 %v540_v24, %v1515_v31  ;;  %v541_v53 = vmul.f32 0.044715, %v525_v30  ;;  %v1543_v54 = vadd.f32 %v950_v51, %v1487_v0  ;;  %v471_v55 = vpop.f32.mrb[9].mxu0 }
 0x25f   :  { %v554_v35 = vadd.f32 %v538_v48, %v1518_v29  ;;  %v539_v56 = vmul.f32 0.044715, %v523_v34  ;;  %v1547_v41 = vadd.f32 %v1487_v0, %v471_v55  ;;  %v951_v57 = vpop.f32.mrb[10].mxu0 }
 0x260   :  { %v572_v58 = vmul.f32 0.7978846, %v556_v52  ;;  %v557_v40 = vadd.f32 %v541_v53, %v1525_v38  ;;  %v512_v61 = vmul.f32 %v1543_v54, %v1543_v54  ;;  %v1553_v42 = vadd.f32 %v951_v57, %v1487_v0  ;;  %v474_v22 = vpop.f32.mrb[11].mxu0 }
 0x261   :  { %v570_v62 = vmul.f32 0.7978846, %v554_v35  ;;  %v555_v12 = vadd.f32 %v539_v56, %v1530_v6  ;;  %v510_v63 = vmul.f32 %v1547_v41, %v1547_v41  ;;  %v1559_v1 = vadd.f32 %v1487_v0, %v474_v22 }
 0x262   :  { %1052 = vtanh.f32 %v572_v58  ;;  %v573_v2 = vmul.f32 0.7978846, %v557_v40  ;;  %v528_v4 = vmul.f32 %v512_v61, %v1543_v54  ;;  %v513_v7 = vmul.f32 %v1553_v42, %v1553_v42 }
 0x263   :  { %1054 = vtanh.f32 %v570_v62  ;;  %v571_v9 = vmul.f32 0.7978846, %v555_v12  ;;  %v526_v16 = vmul.f32 %v510_v63, %v1547_v41  ;;  %v511_v50 = vmul.f32 %v1559_v1, %v1559_v1 }
 0x264   :  { %v1045_v19 = vpop.eup %1044  ;;  %1056 = vtanh.f32 %v573_v2  ;;  %v544_v20 = vmul.f32 0.044715, %v528_v4  ;;  %v529_v59 = vmul.f32 %v513_v7, %v1553_v42 }
 0x265   :  { %v1047_v21 = vpop.eup %1046  ;;  %1058 = vtanh.f32 %v571_v9  ;;  %v542_v10 = vmul.f32 0.044715, %v526_v16  ;;  %v527_v11 = vmul.f32 %v511_v50, %v1559_v1  ;;  %v954_v25 = vpop.f32.mrb[12].mxu0  ;;  %v600_v26 = vadd.f32 1.0, %v1045_v19 }
 0x266   :  { %v1049_v27 = vpop.eup %1048  ;;  %v560_v28 = vadd.f32 %v544_v20, %v1543_v54  ;;  %v545_v60 = vmul.f32 0.044715, %v529_v59  ;;  %v1571_v32 = vadd.f32 %v954_v25, %v1487_v0  ;;  %v487_v5 = vpop.f32.mrb[13].mxu0  ;;  %v598_v33 = vadd.f32 1.0, %v1047_v21 }
 0x267   :  { %v558_v13 = vadd.f32 %v542_v10, %v1547_v41  ;;  %v543_v36 = vmul.f32 0.044715, %v527_v11  ;;  %v1575_v37 = vadd.f32 %v1487_v0, %v487_v5  ;;  %v955_v14 = vpop.f32.mrb[14].mxu0  ;;  %v601_v15 = vadd.f32 1.0, %v1049_v27  ;;  %v1051_v45 = vpop.eup %1050 }
 0x268   :  { %v576_v39 = vmul.f32 0.7978846, %v560_v28  ;;  %v561_v43 = vadd.f32 %v545_v60, %v1553_v42  ;;  %v516_v23 = vmul.f32 %v1571_v32, %v1571_v32  ;;  %v1581_v44 = vadd.f32 %v955_v14, %v1487_v0  ;;  %v490_v18 = vpop.f32.mrb[15].mxu0 }
 0x269   :  { %v574_v46 = vmul.f32 0.7978846, %v558_v13  ;;  %v559_v47 = vadd.f32 %v543_v36, %v1559_v1  ;;  %v514_v24 = vmul.f32 %v1575_v37, %v1575_v37  ;;  %v1587_v30 = vadd.f32 %v1487_v0, %v490_v18 }
 0x26a   :  { %1060 = vtanh.f32 %v576_v39  ;;  %v577_v48 = vmul.f32 0.7978846, %v561_v43  ;;  %v532_v34 = vmul.f32 %v516_v23, %v1571_v32  ;;  %v517_v51 = vmul.f32 %v1581_v44, %v1581_v44 }
 0x26b   :  { %1062 = vtanh.f32 %v574_v46  ;;  %v575_v52 = vmul.f32 0.7978846, %v559_v47  ;;  %v530_v53 = vmul.f32 %v514_v24, %v1575_v37  ;;  %v515_v55 = vmul.f32 %v1587_v30, %v1587_v30 }
 0x26c   :  { %v1053_v35 = vpop.eup %1052  ;;  %1064 = vtanh.f32 %v577_v48  ;;  %v548_v56 = vmul.f32 0.044715, %v532_v34  ;;  %v533_v0 = vmul.f32 %v517_v51, %v1581_v44  ;;  %v599_v57 = vadd.f32 1.0, %v1051_v45 }
 0x26d   :  { %v1055_v58 = vpop.eup %1054  ;;  %1066 = vtanh.f32 %v575_v52  ;;  %v546_v40 = vmul.f32 0.044715, %v530_v53  ;;  %v531_v61 = vmul.f32 %v515_v55, %v1587_v30  ;;  %v614_v22 = vmul.f32 0.5, %v598_v33 }
 0x26e   :  { %v1057_v62 = vpop.eup %1056  ;;  %v564_v12 = vadd.f32 %v548_v56, %v1571_v32  ;;  %v549_v63 = vmul.f32 0.044715, %v533_v0  ;;  %v615_v2 = vmul.f32 0.5, %v599_v57  ;;  %v616_v4 = vmul.f32 0.5, %v600_v26 }
 0x26f   :  { %v1059_v7 = vpop.eup %1058  ;;  %v562_v9 = vadd.f32 %v546_v40, %v1575_v37  ;;  %v547_v16 = vmul.f32 0.044715, %v531_v61  ;;  %v630_v50 = vmul.f32 %v614_v22, %v1493_v3  ;;  %v617_v19 = vmul.f32 0.5, %v601_v15 }
 0x270   :  { %v580_v20 = vmul.f32 0.7978846, %v564_v12  ;;  %v565_v59 = vadd.f32 %v549_v63, %v1581_v44  ;;  %v631_v21 = vmul.f32 %v615_v2, %v1503_v17  ;;  %v632_v10 = vmul.f32 %v616_v4, %v1490_v49 }
 0x271   :  { %v578_v11 = vmul.f32 0.7978846, %v562_v9  ;;  %v563_v25 = vadd.f32 %v547_v16, %v1587_v30  ;;  %v633_v27 = vmul.f32 %v617_v19, %v1498_v8  ;;  %v602_v26 = vadd.f32 1.0, %v1055_v58 }
 0x272   :  { %1068 = vtanh.f32 %v580_v20  ;;  %v581_v28 = vmul.f32 0.7978846, %v565_v59  ;;  %v646_v60 = vpack.c.bf16 %v631_v21, %v630_v50  ;;  %v603_v5 = vadd.f32 1.0, %v1059_v7  ;;  %v1620_v59 = vld [vmem:[%s1659_s6] ss:$0 sm:$0xff]  ;;  %s1193_s6 = smov [#allocation8]  }
 0x273   :  { %1070 = vtanh.f32 %v578_v11  ;;  %v579_v3 = vmul.f32 0.7978846, %v563_v25  ;;  %v647_v33 = vpack.c.bf16 %v633_v27, %v632_v10  ;;  %v618_v13 = vmul.f32 0.5, %v602_v26  ;;  %v1077_v26 = vld [vmem:[#allocation2] sm:$0xff]  ;;  %s859_s20 = sshll.u32 %s1193_s6, 4  ;;  %s860_s20 = int_to_ptr.vmem [resolvable:$true] %s859_s20 }
 0x274   :  { %v1061_v36 = vpop.eup %1060  ;;  %1072 = vtanh.f32 %v581_v28  ;;  %972 = vmatprep.mubr.bf16.mxu1 %v646_v60  ;;  %v619_v17 = vmul.f32 0.5, %v603_v5  ;;  %v604_v14 = vadd.f32 1.0, %v1053_v35  ;;  %v605_v49 = vadd.f32 1.0, %v1057_v62  ;;  %v1078_v5 = vld [vmem:[#allocation2 + $0x18] sm:$0xff]  ;;  %s1158_s21 = scalar_lea.vmem %s860_s20, 2048  ;;  %p1163_p11 = scmp.lt.s32.totalorder %s860_s20, %s860_s20 }
 0x275   :  { %v1063_v15 = vpop.eup %1062  ;;  %1074 = vtanh.f32 %v579_v3  ;;  %973 = vmatmul.mubr.bf16.vlgmr.msra.gmra.mrb[0].mxu1 %v647_v33  ;;  %v634_v8 = vmul.f32 %v618_v13, %v1518_v29  ;;  %v608_v39 = vadd.f32 1.0, %v1061_v36  ;;  %v1079_v33 = vld [vmem:[#allocation2 + $0x8] sm:$0xff]  ;;  %p1159_p10 = scmp.ne.s32.totalorder %s860_s20, %s1158_s21  ;;  %p1164_p12 = scmp.lt.s32.totalorder %s1158_s21, %s1158_s21 }
 0x276   :  { %v1065_v43 = vpop.eup %1064  ;;  %v635_v23 = vmul.f32 %v619_v17, %v1530_v6  ;;  %v620_v18 = vmul.f32 0.5, %v604_v14  ;;  %v621_v45 = vmul.f32 0.5, %v605_v49  ;;  %v606_v46 = vadd.f32 1.0, %v1063_v15 }
 0x277   :  { %v1067_v47 = vpop.eup %1066  ;;  %v609_v24 = vadd.f32 1.0, %v1065_v43  ;;  %v624_v48 = vmul.f32 0.5, %v608_v39  ;;  %p1165_p13 = por %p1164_p12, %p1163_p11 }
 0x278   :  { %v648_v34 = vpack.c.bf16 %v635_v23, %v634_v8  ;;  %v636_v51 = vmul.f32 %v620_v18, %v1515_v31  ;;  %v637_v52 = vmul.f32 %v621_v45, %v1525_v38  ;;  %v607_v53 = vadd.f32 1.0, %v1067_v47  ;;  %v1080_v8 = vld [vmem:[#allocation2 + $0x30] sm:$0xff]  ;;  %v1081_v18 = vld [vmem:[#allocation2 + $0x20] sm:$0xff]  ;;  %v1082_v47 = vld [vmem:[#allocation2 + $0x38] sm:$0xff] }
 0x279   :  { %v622_v55 = vmul.f32 0.5, %v606_v46  ;;  %v625_v35 = vmul.f32 0.5, %v609_v24  ;;  %v640_v0 = vmul.f32 %v624_v48, %v1543_v54  ;;  %v1083_v48 = vld [vmem:[#allocation2 + $0x28] sm:$0xff]  ;;  %p1166_p0 = pnand %p1165_p13, %p1159_p10 }
 0x27a   :  { %976 = vmatprep.mubr.bf16.mxu1 %v648_v34  ;;  %v649_v29 = vpack.c.bf16 %v637_v52, %v636_v51  ;;  %v623_v56 = vmul.f32 0.5, %v607_v53 }
 0x27b   :  { %v641_v6 = vmul.f32 %v625_v35, %v1553_v42  ;;  %v638_v58 = vmul.f32 %v622_v55, %v1547_v41 }
 0x27c   :  { %v1069_v57 = vpop.eup %1068  ;;  %v639_v40 = vmul.f32 %v623_v56, %v1559_v1 }
 0x27d   :  { %v1071_v61 = vpop.eup %1070  ;;  %977 = vmatmul.mubr.bf16.gmra.mrb[4].mxu1 %v649_v29  ;;  %v651_v31 = vpack.c.bf16 %v641_v6, %v640_v0  ;;  %v612_v22 = vadd.f32 1.0, %v1069_v57  ;;  %v1084_v29 = vld [vmem:[#allocation2 + $0x50] sm:$0xff]  ;;  %v1085_v57 = vld [vmem:[#allocation2 + $0x40] sm:$0xff] }
 0x27e   :  { %v1073_v38 = vpop.eup %1072  ;;  %v650_v62 = vpack.c.bf16 %v639_v40, %v638_v58  ;;  %v610_v12 = vadd.f32 1.0, %v1071_v61  ;;  %v1086_v61 = vld [vmem:[#allocation2 + $0x58] sm:$0xff] }
 0x27f   :  { %v1075_v63 = vpop.eup %1074  ;;  %v613_v2 = vadd.f32 1.0, %v1073_v38  ;;  %v628_v4 = vmul.f32 0.5, %v612_v22  ;;  %v1087_v22 = vld [vmem:[#allocation2 + $0x48] sm:$0xff] }
 0x280   :  { %980 = vmatprep.mubr.bf16.mxu1 %v650_v62  ;;  %v611_v7 = vadd.f32 1.0, %v1075_v63  ;;  %v626_v54 = vmul.f32 0.5, %v610_v12 }
 0x281   :  { %v629_v9 = vmul.f32 0.5, %v613_v2  ;;  %v644_v16 = vmul.f32 %v628_v4, %v1571_v32 }
 0x282   :  { %v627_v42 = vmul.f32 0.5, %v611_v7  ;;  %v642_v1 = vmul.f32 %v626_v54, %v1575_v37  ;;  %v1076_v37 = vld [vmem:[#allocation2 + $0x10] sm:$0xff] }
 0x283   :  { %v645_v41 = vmul.f32 %v629_v9, %v1581_v44  ;;  %v1088_v7 = vld [vmem:[#allocation2 + $0x70] sm:$0xff] }
 0x284   :  { %v643_v50 = vmul.f32 %v627_v42, %v1587_v30 }
 0x285   :  { %981 = vmatmul.mubr.bf16.gmra.mrb[8].mxu1 %v651_v31  ;;  %v653_v19 = vpack.c.bf16 %v645_v41, %v644_v16  ;;  %v1089_v16 = vld [vmem:[#allocation2 + $0x60] sm:$0xff] }
 0x286   :  { %v652_v20 = vpack.c.bf16 %v643_v50, %v642_v1  ;;  %v1090_v50 = vld [vmem:[#allocation2 + $0x78] sm:$0xff] }
 0x288   :  { %984 = vmatprep.mubr.bf16.mxu1 %v652_v20  ;;  %v1091_v20 = vld [vmem:[#allocation2 + $0x68] sm:$0xff] }
 0x28d   :  { %985 = vmatmul.mubr.bf16.gmra.mrb[12].mxu1 %v653_v19 }
 0x348   :  { %v974_v21 = vpop.f32.mrb[0].mxu1 }
 0x349   :  { %v768_v10 = vadd.f32 %v974_v21, %v1620_v59  ;;  %v759_v32 = vpop.f32.mrb[1].mxu1 }
 0x34a   :  { %v760_v44 = vadd.f32 %v1620_v59, %v759_v32  ;;  %v975_v11 = vpop.f32.mrb[2].mxu1 }
 0x34b   :  { %v824_v25 = vadd.f32 %v1076_v37, %v768_v10  ;;  %v771_v30 = vadd.f32 %v975_v11, %v1620_v59  ;;  %v762_v27 = vpop.f32.mrb[3].mxu1 }
 0x34c   :  { %v822_v28 = vadd.f32 %v1077_v26, %v760_v44  ;;  %v763_v60 = vadd.f32 %v1620_v59, %v762_v27 }
 0x34d   :  { %840 = vst [vmem:[#allocation8 + $0x10] sm:$0xff] %v824_v25  ;;  %v825_v3 = vadd.f32 %v1078_v5, %v771_v30 }
 0x34e   :  { %838 = vst [vmem:[#allocation8] sm:$0xff] %v822_v28  ;;  %v823_v13 = vadd.f32 %v1079_v33, %v763_v60 }
 0x34f   :  { %841 = vst [vmem:[#allocation8 + $0x18] sm:$0xff] %v825_v3 }
 0x350   :  { %839 = vst [vmem:[#allocation8 + $0x8] sm:$0xff] %v823_v13  ;;  %v978_v36 = vpop.f32.mrb[4].mxu1 }
 0x351   :  { %v784_v17 = vadd.f32 %v978_v36, %v1620_v59  ;;  %v775_v14 = vpop.f32.mrb[5].mxu1 }
 0x352   :  { %v776_v49 = vadd.f32 %v1620_v59, %v775_v14  ;;  %v979_v15 = vpop.f32.mrb[6].mxu1 }
 0x353   :  { %v828_v39 = vadd.f32 %v1080_v8, %v784_v17  ;;  %v787_v43 = vadd.f32 %v979_v15, %v1620_v59  ;;  %v778_v23 = vpop.f32.mrb[7].mxu1 }
 0x354   :  { %v826_v45 = vadd.f32 %v1081_v18, %v776_v49  ;;  %v779_v46 = vadd.f32 %v1620_v59, %v778_v23 }
 0x355   :  { %844 = vst [vmem:[#allocation8 + $0x30] sm:$0xff] %v828_v39  ;;  %v829_v24 = vadd.f32 %v1082_v47, %v787_v43 }
 0x356   :  { %842 = vst [vmem:[#allocation8 + $0x20] sm:$0xff] %v826_v45  ;;  %v827_v34 = vadd.f32 %v1083_v48, %v779_v46 }
 0x357   :  { %845 = vst [vmem:[#allocation8 + $0x38] sm:$0xff] %v829_v24 }
 0x358   :  { %843 = vst [vmem:[#allocation8 + $0x28] sm:$0xff] %v827_v34  ;;  %v982_v51 = vpop.f32.mrb[8].mxu1 }
 0x359   :  { %v800_v52 = vadd.f32 %v982_v51, %v1620_v59  ;;  %v791_v53 = vpop.f32.mrb[9].mxu1 }
 0x35a   :  { %v792_v55 = vadd.f32 %v1620_v59, %v791_v53  ;;  %v983_v35 = vpop.f32.mrb[10].mxu1 }
 0x35b   :  { %v832_v56 = vadd.f32 %v1084_v29, %v800_v52  ;;  %v803_v0 = vadd.f32 %v983_v35, %v1620_v59  ;;  %v794_v6 = vpop.f32.mrb[11].mxu1 }
 0x35c   :  { %v830_v58 = vadd.f32 %v1085_v57, %v792_v55  ;;  %v795_v40 = vadd.f32 %v1620_v59, %v794_v6 }
 0x35d   :  { %848 = vst [vmem:[#allocation8 + $0x50] sm:$0xff] %v832_v56  ;;  %v833_v31 = vadd.f32 %v1086_v61, %v803_v0 }
 0x35e   :  { %846 = vst [vmem:[#allocation8 + $0x40] sm:$0xff] %v830_v58  ;;  %v831_v38 = vadd.f32 %v1087_v22, %v795_v40 }
 0x35f   :  { %849 = vst [vmem:[#allocation8 + $0x58] sm:$0xff] %v833_v31 }
 0x360   :  { %847 = vst [vmem:[#allocation8 + $0x48] sm:$0xff] %v831_v38  ;;  %v986_v62 = vpop.f32.mrb[12].mxu1 }
 0x361   :  { %v816_v12 = vadd.f32 %v986_v62, %v1620_v59  ;;  %v807_v63 = vpop.f32.mrb[13].mxu1 }
 0x362   :  { %v808_v2 = vadd.f32 %v1620_v59, %v807_v63  ;;  %v987_v4 = vpop.f32.mrb[14].mxu1 }
 0x363   :  { %v836_v54 = vadd.f32 %v1088_v7, %v816_v12  ;;  %v819_v9 = vadd.f32 %v987_v4, %v1620_v59  ;;  %v810_v42 = vpop.f32.mrb[15].mxu1 }
 0x364   :  { %v834_v41 = vadd.f32 %v1089_v16, %v808_v2  ;;  %v811_v1 = vadd.f32 %v1620_v59, %v810_v42 }
 0x365   :  { %852 = vst [vmem:[#allocation8 + $0x70] sm:$0xff] %v836_v54  ;;  %v837_v19 = vadd.f32 %v1090_v50, %v819_v9 }
 0x366   :  { %850 = vst [vmem:[#allocation8 + $0x60] sm:$0xff] %v834_v41  ;;  %v835_v21 = vadd.f32 %v1091_v20, %v811_v1 }
 0x367   :  { %853 = vst [vmem:[#allocation8 + $0x78] sm:$0xff] %v837_v19 }
 0x368   :  { %851 = vst [vmem:[#allocation8 + $0x68] sm:$0xff] %v835_v21 }
 0x369   :  { %1169 = shalt.err (!%p1166_p0)
}
 0x36a   :  { %s1170_s24 = scalar_lea.hbm %s1660_s7, 2048 }
 0x36b   :  { %p1171_p1 = scmp.ne.s32.totalorder %s1660_s7, %s1170_s24  ;;  %p1174_p2 = scmp.lt.u32.totalorder %s1170_s24, %s1660_s7 }
 0x36d   :  { %p1176_p3 = pnand %p1174_p2, %p1171_p1 }
 0x36f   :  { %1179 = shalt.err (!%p1176_p3)
}
 0x370   :  { %865 = dma.vmem_to_hbm [thread:$0]  %s860_s20, 2048, %s1660_s7, [#allocation4], %s1190_s3, %s1190_s3, %s1191_s25  }
 0x371   :  { %1184 = dma.done.wait [#allocation4], 2048  }
 0x372   :  { %1185 = vsyncadd [#allocation4], 4294965248 }
 0x373   :  { %869 = vsyncpa [#allocation3], 1 }
 0x374   :  { %870 = vsyncpa [#allocation6], 1 }
 0x375   :  { %871 = vsyncpa [#allocation4], 1 }

</bundles_post_ra>
